<compile_context>
chip_gen: v7x
topology: tpu7x:2x2x1
jax: 0.10.0
libtpu: 0.0.40
codegen_flags: <defaults>
</compile_context>

<pallas_src>
import jax
import jax.numpy as jnp
from jax.experimental import pallas as pl
from jax.experimental.pallas import tpu as pltpu


def _corr_kernel(x_ref, w1_ref, b1_ref, w2_ref, b2_ref, o_ref):
    # Layer 1: Linear(R -> H) + ReLU, f32 accumulation on the MXU.
    h = jnp.dot(x_ref[...], w1_ref[...], preferred_element_type=jnp.float32)
    h = jnp.maximum(h + b1_ref[...], 0.0)

    # Layer 2: 1-wide head.  VPU broadcast-multiply + XLU lane reduce keeps the
    # result a single column; bias + tanh touch only block_b elements.
    y = jnp.sum(h * w2_ref[...], axis=-1, keepdims=True) + b2_ref[...]
    o_ref[...] = jnp.tanh(y).astype(o_ref.dtype)


def _auto_block_b(B):
    # Aim for ~16 grid steps (>= 8 per TensorCore on v7x) with a tile large
    # enough to amortize the ~0.35us per-step overhead.  Clamp to [256, 4096],
    # multiple of 256; VMEM stays tiny (4096x128 f32 double-buffered = 4 MiB).
    blk = (B // 16) // 256 * 256
    return max(256, min(4096, blk))


def correlation_network(x, params, *, block_b=None):
    """x: [B, R] float32.

    params = (w1 [R, H], b1 [1, H], w2 [1, H], b2 [1, 1])  (w1, w2 stored so the
    kernel never transposes).  Returns y: [B, 1] float32
        = tanh(relu(x @ w1 + b1) @ w2.T + b2).
    """
    w1, b1, w2, b2 = params
    B, R = x.shape
    H = w1.shape[1]

    if block_b is None:
        block_b = _auto_block_b(B)

    n_tiles = pl.cdiv(B, block_b)      # ragged tail: partial last block,
    full = lambda i: (0, 0)            # out-of-range output rows are masked.

    return pl.pallas_call(
        _corr_kernel,
        out_shape=jax.ShapeDtypeStruct((B, 1), jnp.float32),
        grid_spec=pl.GridSpec(
            grid=(n_tiles,),
            in_specs=[
                pl.BlockSpec((block_b, R), lambda i: (i, 0)),   # x tile
                pl.BlockSpec((R, H), full),                     # W1 [in, out]
                pl.BlockSpec((1, H), full),                     # b1
                pl.BlockSpec((1, H), full),                     # W2 row [1, in]
                pl.BlockSpec((1, 1), full),                     # b2
            ],
            out_specs=pl.BlockSpec((block_b, 1), lambda i: (i, 0)),
        ),
        compiler_params=pltpu.CompilerParams(
            dimension_semantics=("parallel",),   # batch axis -> both TCs on v7x
        ),
    )(x, w1, b1, w2, b2)


def init_params(key, input_dim=128, hidden_dim=64):
    """PyTorch nn.Linear default init.  w1 stored [in, out]; w2 stored [1, in]."""
    ks = jax.random.split(key, 4)

    def lin(kw, kb, fan_in, fan_out):
        bound = 1.0 / jnp.sqrt(fan_in)
        w = jax.random.uniform(kw, (fan_in, fan_out), jnp.float32, -bound, bound)
        b = jax.random.uniform(kb, (1, fan_out), jnp.float32, -bound, bound)
        return w, b

    w1, b1 = lin(ks[0], ks[1], input_dim, hidden_dim)
    w2t, b2 = lin(ks[2], ks[3], hidden_dim, 1)          # [H, 1], [1, 1]
    return (w1, b1, w2t.T, b2)                          # w2 as row [1, H]


def _reference(x, params):
    w1, b1, w2, b2 = params
    h = jnp.maximum(x @ w1 + b1, 0.0)
    return jnp.tanh(jnp.sum(h * w2, axis=-1, keepdims=True) + b2)


if __name__ == "__main__":
    key = jax.random.PRNGKey(0)
    k_x, k_p = jax.random.split(key)

    # Small demo shapes; B deliberately not a multiple of the tile so the
    # partial-last-block (no-pad) path is exercised.
    B, R, H = 300, 128, 64
    x = jax.random.normal(k_x, (B, R), jnp.float32)
    params = init_params(k_p, input_dim=R, hidden_dim=H)

    y = correlation_network(x, params)
    jax.block_until_ready(y)

    y_ref = _reference(x, params)
    assert y.shape == (B, 1)
    assert jnp.allclose(y, y_ref, atol=2e-5, rtol=1e-5)

    print("KERNEL_OK")
</pallas_src>

<mosaic_0001>
module attributes {stable_mosaic.version = 11 : i64} {
  func.func @_corr_kernel(%arg0: i32, %arg1: memref<256x128xf32, #tpu.memory_space<vmem>>, %arg2: memref<128x64xf32, #tpu.memory_space<vmem>>, %arg3: memref<1x64xf32, #tpu.memory_space<vmem>>, %arg4: memref<1x64xf32, #tpu.memory_space<vmem>>, %arg5: memref<1x1xf32, #tpu.memory_space<vmem>>, %arg6: memref<256x1xf32, #tpu.memory_space<vmem>>) attributes {dimension_semantics = [#tpu.dimension_semantics<parallel>], iteration_bounds = array<i64: 2>, scalar_prefetch = 0 : i64, scratch_operands = 0 : i64, tpu.core_type = #tpu.core_type<tc>, window_params = [{transform_indices = @transform_0, window_bounds = array<i64: 256, 128>}, {pipeline_mode = #tpu.pipeline_mode<synchronous>, transform_indices = @transform_1, window_bounds = array<i64: 128, 64>}, {pipeline_mode = #tpu.pipeline_mode<synchronous>, transform_indices = @transform_2, window_bounds = array<i64: 1, 64>}, {pipeline_mode = #tpu.pipeline_mode<synchronous>, transform_indices = @transform_3, window_bounds = array<i64: 1, 64>}, {pipeline_mode = #tpu.pipeline_mode<synchronous>, transform_indices = @transform_4, window_bounds = array<i64: 1, 1>}, {transform_indices = @transform_5, window_bounds = array<i64: 256, 1>}]} {
    %c0 = arith.constant 0 : index
    %c0_0 = arith.constant 0 : index
    %0 = vector.load %arg1[%c0, %c0_0] : memref<256x128xf32, #tpu.memory_space<vmem>>, vector<256x128xf32>
    %c0_1 = arith.constant 0 : index
    %c0_2 = arith.constant 0 : index
    %1 = vector.load %arg2[%c0_1, %c0_2] : memref<128x64xf32, #tpu.memory_space<vmem>>, vector<128x64xf32>
    %cst = arith.constant dense<0.000000e+00> : vector<256x64xf32>
    %2 = tpu.matmul %0, %1, %cst {dimension_numbers = #tpu.dot_dimension_numbers<[1], [0], [0], [1], [0, 0, 1, 1], [], []>} : vector<256x128xf32>, vector<128x64xf32>, vector<256x64xf32> -> vector<256x64xf32>
    %c0_3 = arith.constant 0 : index
    %c0_4 = arith.constant 0 : index
    %3 = vector.load %arg3[%c0_3, %c0_4] : memref<1x64xf32, #tpu.memory_space<vmem>>, vector<1x64xf32>
    %4 = vector.broadcast %3 : vector<1x64xf32> to vector<256x64xf32>
    %5 = arith.addf %2, %4 : vector<256x64xf32>
    %cst_5 = arith.constant 0.000000e+00 : f32
    %6 = vector.broadcast %cst_5 : f32 to vector<256x64xf32>
    %7 = arith.maximumf %5, %6 : vector<256x64xf32>
    %c0_6 = arith.constant 0 : index
    %c0_7 = arith.constant 0 : index
    %8 = vector.load %arg4[%c0_6, %c0_7] : memref<1x64xf32, #tpu.memory_space<vmem>>, vector<1x64xf32>
    %9 = vector.broadcast %8 : vector<1x64xf32> to vector<256x64xf32>
    %10 = arith.mulf %7, %9 : vector<256x64xf32>
    %cst_8 = arith.constant dense<0.000000e+00> : vector<256xf32>
    %11 = vector.multi_reduction <add>, %10, %cst_8 [1] : vector<256x64xf32> to vector<256xf32>
    %12 = vector.shape_cast %11 : vector<256xf32> to vector<256x1xf32>
    %c0_9 = arith.constant 0 : index
    %c0_10 = arith.constant 0 : index
    %13 = vector.load %arg5[%c0_9, %c0_10] : memref<1x1xf32, #tpu.memory_space<vmem>>, vector<1x1xf32>
    %14 = vector.broadcast %13 : vector<1x1xf32> to vector<256x1xf32>
    %15 = arith.addf %12, %14 : vector<256x1xf32>
    %16 = math.tanh %15 : vector<256x1xf32>
    %c0_11 = arith.constant 0 : index
    %c0_12 = arith.constant 0 : index
    %17 = vector.load %arg6[%c0_11, %c0_12] : memref<256x1xf32, #tpu.memory_space<vmem>>, vector<256x1xf32>
    tpu.vector_store %arg6[%c0_11, %c0_12], %16 {strides = array<i32>} : memref<256x1xf32, #tpu.memory_space<vmem>>, vector<256x1xf32>,
    return
  }
  func.func @transform_0(%arg0: i32) -> (i32, i32) {
    %c0_i32 = arith.constant 0 : i32
    %c0_i32_0 = arith.constant 0 : i32
    return %arg0, %c0_i32 : i32, i32
  }
  func.func @transform_1(%arg0: i32) -> (i32, i32) {
    %c0_i32 = arith.constant 0 : i32
    %c0_i32_0 = arith.constant 0 : i32
    %c0_i32_1 = arith.constant 0 : i32
    return %c0_i32, %c0_i32_0 : i32, i32
  }
  func.func @transform_2(%arg0: i32) -> (i32, i32) {
    %c0_i32 = arith.constant 0 : i32
    %c0_i32_0 = arith.constant 0 : i32
    %c0_i32_1 = arith.constant 0 : i32
    return %c0_i32, %c0_i32_0 : i32, i32
  }
  func.func @transform_3(%arg0: i32) -> (i32, i32) {
    %c0_i32 = arith.constant 0 : i32
    %c0_i32_0 = arith.constant 0 : i32
    %c0_i32_1 = arith.constant 0 : i32
    return %c0_i32, %c0_i32_0 : i32, i32
  }
  func.func @transform_4(%arg0: i32) -> (i32, i32) {
    %c0_i32 = arith.constant 0 : i32
    %c0_i32_0 = arith.constant 0 : i32
    %c0_i32_1 = arith.constant 0 : i32
    return %c0_i32, %c0_i32_0 : i32, i32
  }
  func.func @transform_5(%arg0: i32) -> (i32, i32) {
    %c0_i32 = arith.constant 0 : i32
    %c0_i32_0 = arith.constant 0 : i32
    return %arg0, %c0_i32 : i32, i32
  }
}

</mosaic_0001>

<bundles_post_ra>
// kernel: tpu_custom_call.1
= control target key start
LH: loop header
LB: loop body
LE: loop exit
PB: predicated region body
PF: predicated region fallthrough
CT: control target
= control target key end

     0   :  { %s2227_s0 = inlined_call_operand.hbm [shape: f32[300,128], index: 0, kind: input, shape index: {}]   ;;  %s2228_s1 = inlined_call_operand.vmem [shape: f32[128,64], index: 1, kind: input, shape index: {}]   ;;  %s2229_s2 = inlined_call_operand.vmem [shape: f32[1,64], index: 2, kind: input, shape index: {}]   ;;  %s2230_s3 = inlined_call_operand.vmem [shape: f32[1,64], index: 3, kind: input, shape index: {}]   ;;  %s2231_s4 = inlined_call_operand.<no memory space> [shape: f32[1,1], index: 4, kind: input, shape index: {}]   ;;  %s2232_s5 = inlined_call_operand.vmem [shape: f32[300,1], index: 5, kind: output, shape index: {}]  }
   0x1   :  { %v10_v0 = vstv %s2231_s4 }
   0x2   :  { %11 = vst [vmem:[#allocation2] sm:$0x1] %v10_v0 }
   0x3   :  { %12 = vsyncpa [#allocation4], 0 }
   0x4   :  { %14 = vsyncpa [#allocation4 + $0x1], 0  ;;  %s1699_s20 = smov 0   ;;  %s1701_s21 = smov 0  }
   0x5   :  { %s1703_s22 = smov 0   ;;  %s1705_s23 = smov 0  }
   0x6 LB: > { %s1718_s4 = sadd.s32 4294967295, %s1629_s23   ;;  %s1721_s24 = sadd.s32 1, %s1629_s23   ;;  %s1629_s23 = sphi %s1705_s23, %s2243_s23   ;;  %s1625_s22 = sphi %s1703_s22, %s2242_s22   ;;  %s1621_s21 = sphi %s1701_s21, %s2241_s21   ;;  %s1617_s20 = sphi %s1699_s20, %s2240_s20  }
   0x7   : > { %s24_s25 = ssub.s32 %s1629_s23, %s1721_s24  ;;  %s27_s26 = sadd.s32 1, %s1625_s22 }
   0x8   : > { %p25_p0 = scmp.eq.s32.totalorder %s24_s25, 0  ;;  %p34_p1 = scmp.ne.s32.totalorder %s1625_s22, %s1621_s21 }
   0x9   : > { %p35_p2 = scmp.eq.s32.totalorder %s1629_s23, 0  ;;  %p40_p3 = scmp.ne.s32.totalorder %s1621_s21, %s1617_s20 }
   0xa   : > { %s1731_s27 = scalar_select %p25_p0, %s1625_s22, %s27_s26  }
   0xb   : > { %p36_p4 = por %p35_p2, %p34_p1  ;;  %p41_p5 = scmp.eq.s32.totalorder %s1718_s4, 0 }
   0xc   : > { %p148_p6 = scmp.eq.s32.totalorder %s1718_s4, 1  ;;  %p1161_p9 = scmp.ge.s32.totalorder %s1629_s23, 2 }
   0xd   : > { %p1735_p7 = por %p41_p5, %p40_p3 }
   0xe   : > { %p1739_p8 = por %p148_p6, %p34_p1  ;;  %182 = sbr.rel (%p1161_p9) target bundleno = 56 (0x38), region = 32 }
  0x15   : > { %185 = sbr.rel (!%p36_p4) target bundleno = 56 (0x38), region = 36  ;;  %s186_s30 = sand.u32 (%p36_p4), 1, %s1625_s22  }
  0x16   : > { %s1163_s6 = sshll.u32 (%p36_p4), %s1629_s23, 5  ;;  %s1162_s7 = sshll.u32 (%p36_p4), %s186_s30, 8 }
  0x17   : > { %s192_s8 = ssub.s32 (%p36_p4), 38, %s1163_s6  ;;  %s1749_s11 = scalar_lea.sflag (%p36_p4), [#allocation4], %s186_s30 }
  0x18   : > { %p193_p10 = scmp.lt.s32.totalorder (%p36_p4), %s192_s8, 32  ;;  %s190_s12 = scalar_lea.vmem (%p36_p4), [#allocation3], %s1162_s7 }
  0x1c   : > { %s2245_s8 = smov (!%p193_p10, %s192_s8), 32 }
  0x1d   : > { %s1746_s9 = sshll.u32 %s2245_s8, 7 }
  0x1e   : > { %s197_s10 = ssub.s32 4096, %s1746_s9 }
  0x1f   : > { %198 = vsyncadd %s1749_s11, %s197_s10  ;;  %p1165_p11 = scmp.ne.s32.totalorder %s1746_s9, 0  ;;  %s1192_s13 = sshll.u32 %s1629_s23, 12 }
  0x20   : > { %s1757_s16 = scalar_lea.hbm %s2227_s0, %s1192_s13  ;;  %s203_s17 = sshll.u32 %s190_s12, 4  ;;  %s1759_s17 = int_to_ptr.vmem [resolvable:$true] %s203_s17 }
  0x21   : > { %s1535_s18 = scalar_lea.hbm %s1757_s16, %s1746_s9  ;;  %s1539_s25 = scalar_lea.hbm %s2227_s0, 4864 }
  0x22   : > { %p1536_p12 = scmp.ne.s32.totalorder %s1757_s16, %s1535_s18  ;;  %p1540_p1 = scmp.lt.u32.totalorder %s1757_s16, %s2227_s0 }
  0x23   : > { %p1541_p2 = scmp.lt.u32.totalorder %s1539_s25, %s1535_s18  ;;  %p1543_p4 = scmp.lt.u32.totalorder %s1535_s18, %s1757_s16 }
  0x24   : > { %p1537_p13 = pnand %p1536_p12, %p1165_p11 }
  0x25   : > { %p1542_p3 = por %p1541_p2, %p1540_p1 }
  0x26   : > { %p1538_p0 = pneg %p1537_p13 }
  0x27   : > { %p1544_p5 = por %p1543_p4, %p1542_p3 }
  0x29   : > { %p1545_p6 = pnand %p1544_p5, %p1538_p0 }
  0x2b   : > { %1548 = shalt.err (!%p1545_p6)
}
  0x2c   : > { %s1549_s6 = scalar_lea.vmem %s1759_s17, %s1746_s9  ;;  %s1663_s7 = smov [#allocation3]  }
  0x2d   : > { %p1550_p9 = scmp.ne.s32.totalorder %s1759_s17, %s1549_s6  ;;  %s1553_s8 = sshll.u32 %s1663_s7, 4  ;;  %s1554_s8 = int_to_ptr.vmem [resolvable:$false] %s1553_s8 }
  0x2e   : > { %s1555_s10 = scalar_lea.vmem %s1554_s8, 8192  ;;  %p1556_p13 = scmp.lt.s32.totalorder %s1759_s17, %s1554_s8 }
  0x2f   : > { %p1551_p10 = pnand %p1550_p9, %p1165_p11  ;;  %p1557_p1 = scmp.lt.s32.totalorder %s1555_s10, %s1549_s6 }
  0x31   : > { %p1552_p12 = pneg %p1551_p10  ;;  %p1558_p2 = por %p1557_p1, %p1556_p13 }
  0x33   : > { %p1559_p3 = pnand %p1558_p2, %p1552_p12 }
  0x35   : > { %1562 = shalt.err (!%p1559_p3)
}
  0x36   : > { %s1664_s12 = smov 128   ;;  %s1665_s13 = smov 8  }
  0x37   : > { %209 = dma.hbm_to_vmem [thread:$0]  (%p1165_p11), %s1757_s16, %s1746_s9, %s1759_s17, %s1749_s11, %s1664_s12, %s1664_s12, %s1665_s13  }
  0x38 PF: > { %p1169_p0 = scmp.ge.s32.totalorder %s1629_s23, 1  ;;  %p211_p4 = scmp.lt.s32.totalorder %s1629_s23, 3 }
  0x3a   : > { %p212_p5 = pnand %p1169_p0, %p211_p4 }
  0x3b   : > { %s217_s14 = sand.u32 (!%p212_p5), 1, %s1621_s21  }
  0x3c   : > { %215 = sbr.rel (%p212_p5) target bundleno = 595 (0x253), region = 40  ;;  %s1789_s15 = sshll.u32 (!%p212_p5), %s217_s14, 8 }
  0x3d   : > { %s218_s18 = scalar_lea.sflag (!%p212_p5), [#allocation4], %s217_s14  ;;  %s1792_s19 = scalar_lea.vmem (!%p212_p5), [#allocation3], %s1789_s15 }
  0x43   : > { %1612 = dma.done.wait (%p1735_p7), %s218_s18, 4096  }
  0x44   : > { %1614 = vsyncadd (%p1735_p7), %s218_s18, 4294963200  ;;  %v289_v1 = vld [vmem:[%s2228_s1] sm:$0xff]  ;;  %v290_v2 = vld [vmem:[%s2228_s1 + $0x8] sm:$0xff]  ;;  %vm608_vm0 = vcmask 523264   ;;  %vm776_vm1 = vcmask 7168   ;;  %s1995_s18 = scalar_lea.vmem [#allocation5], %s1789_s15  }
  0x45   : > { %v291_v3 = vld [vmem:[%s2228_s1 + $0x10] sm:$0xff]  ;;  %v1324_v4 = vpack.c.bf16 %v290_v2, %v289_v1  ;;  %v292_v5 = vld [vmem:[%s2228_s1 + $0x18] sm:$0xff]  ;;  %v293_v7 = vld [vmem:[%s2228_s1 + $0x20] sm:$0xff]  ;;  %s1176_s15 = sshll.u32 (%p1739_p8), %s1718_s4, 5  ;;  %s1193_s9 = sshll.u32 (%p1739_p8), %s1718_s4, 8 }
  0x46   : > { %v1328_v6 = vpack.c.bf16 %v292_v5, %v291_v3  ;;  %v294_v8 = vld [vmem:[%s2228_s1 + $0x28] sm:$0xff]  ;;  %v295_v12 = vld [vmem:[%s2228_s1 + $0x30] sm:$0xff]  ;;  %v296_v13 = vld [vmem:[%s2228_s1 + $0x38] sm:$0xff]  ;;  %s817_s11 = ssub.s32 (%p1739_p8), 38, %s1176_s15  ;;  %s2092_s17 = scalar_lea.vmem (%p1739_p8), %s2232_s5, %s1193_s9  }
  0x47   : > { %1325 = vmatprep.subr.bf16.mxu0 %v1324_v4  ;;  %1356 = vmatprep.subr.bf16.mxu1 %v1324_v4  ;;  %v1332_v9 = vpack.c.bf16 %v294_v8, %v293_v7  ;;  %v257_v10 = vld [vmem:[%s1792_s19] sm:$0xff]  ;;  %v1336_v14 = vpack.c.bf16 %v296_v13, %v295_v12  ;;  %v299_v18 = vld [vmem:[%s2228_s1 + $0x50] sm:$0xff]  ;;  %v300_v19 = vld [vmem:[%s2228_s1 + $0x58] sm:$0xff]  ;;  %p818_p7 = scmp.lt.s32.totalorder (%p1739_p8), %s817_s11, 32 }
  0x48   : > { %1327 = vmatpush3.bf16.msra.mxu0 %v1324_v4  ;;  %1364 = vmatpush3.bf16.msra.mxu1 %v1324_v4  ;;  %v273_v11 = vld [vmem:[%s1792_s19 + $0x80] sm:$0xff]  ;;  %v1344_v20 = vpack.c.bf16 %v300_v19, %v299_v18  ;;  %v303_v24 = vld [vmem:[%s2228_s1 + $0x70] sm:$0xff]  ;;  %v304_v25 = vld [vmem:[%s2228_s1 + $0x78] sm:$0xff] }
  0x49   : > { %1329 = vmatprep.subr.bf16.mxu0 %v1328_v6  ;;  %1357 = vmatprep.subr.bf16.mxu1 %v1328_v6  ;;  %v297_v15 = vld [vmem:[%s2228_s1 + $0x40] sm:$0xff]  ;;  %v298_v16 = vld [vmem:[%s2228_s1 + $0x48] sm:$0xff]  ;;  %v1352_v26 = vpack.c.bf16 %v304_v25, %v303_v24  ;;  %v259_v29 = vld [vmem:[%s1792_s19 + $0x10] sm:$0xff] }
  0x4a   : > { %1276 = vmatprep.mubr.f32.mxu0 %v257_v10  ;;  %1300 = vmatprep.mubr.f32.mxu1 %v273_v11  ;;  %v1340_v17 = vpack.c.bf16 %v298_v16, %v297_v15  ;;  %v301_v21 = vld [vmem:[%s2228_s1 + $0x60] sm:$0xff]  ;;  %v302_v22 = vld [vmem:[%s2228_s1 + $0x68] sm:$0xff]  ;;  %v275_v30 = vld [vmem:[%s1792_s19 + $0x90] sm:$0xff] }
  0x4b   : > { %v1348_v23 = vpack.c.bf16 %v302_v22, %v301_v21  ;;  %v258_v27 = vld [vmem:[%s1792_s19 + $0x8] sm:$0xff]  ;;  %v260_v31 = vld [vmem:[%s1792_s19 + $0x18] sm:$0xff]  ;;  %v261_v33 = vld [vmem:[%s1792_s19 + $0x20] sm:$0xff] }
  0x4c   : > { %1331 = vmatpush3.bf16.msra.mxu0 %v1328_v6  ;;  %1365 = vmatpush3.bf16.msra.mxu1 %v1328_v6  ;;  %v274_v28 = vld [vmem:[%s1792_s19 + $0x88] sm:$0xff]  ;;  %v276_v32 = vld [vmem:[%s1792_s19 + $0x98] sm:$0xff]  ;;  %v277_v34 = vld [vmem:[%s1792_s19 + $0xa0] sm:$0xff] }
  0x4d   : > { %1333 = vmatprep.subr.bf16.mxu0 %v1332_v9  ;;  %1358 = vmatprep.subr.bf16.mxu1 %v1332_v9  ;;  %v262_v35 = vld [vmem:[%s1792_s19 + $0x28] sm:$0xff]  ;;  %v263_v37 = vld [vmem:[%s1792_s19 + $0x30] sm:$0xff]  ;;  %v264_v39 = vld [vmem:[%s1792_s19 + $0x38] sm:$0xff] }
  0x4e   : > { %v278_v36 = vld [vmem:[%s1792_s19 + $0xa8] sm:$0xff]  ;;  %v279_v38 = vld [vmem:[%s1792_s19 + $0xb0] sm:$0xff]  ;;  %v280_v40 = vld [vmem:[%s1792_s19 + $0xb8] sm:$0xff] }
  0x4f   : > { %v265_v41 = vld [vmem:[%s1792_s19 + $0x40] sm:$0xff]  ;;  %v266_v43 = vld [vmem:[%s1792_s19 + $0x48] sm:$0xff]  ;;  %v267_v45 = vld [vmem:[%s1792_s19 + $0x50] sm:$0xff] }
  0x50   : > { %1335 = vmatpush3.bf16.msra.mxu0 %v1332_v9  ;;  %1366 = vmatpush3.bf16.msra.mxu1 %v1332_v9  ;;  %v281_v42 = vld [vmem:[%s1792_s19 + $0xc0] sm:$0xff]  ;;  %v282_v44 = vld [vmem:[%s1792_s19 + $0xc8] sm:$0xff]  ;;  %v283_v46 = vld [vmem:[%s1792_s19 + $0xd0] sm:$0xff] }
  0x51   : > { %1337 = vmatprep.subr.bf16.mxu0 %v1336_v14  ;;  %1359 = vmatprep.subr.bf16.mxu1 %v1336_v14  ;;  %v268_v47 = vld [vmem:[%s1792_s19 + $0x58] sm:$0xff]  ;;  %v269_v49 = vld [vmem:[%s1792_s19 + $0x60] sm:$0xff]  ;;  %v270_v51 = vld [vmem:[%s1792_s19 + $0x68] sm:$0xff] }
  0x52   : > { %v284_v48 = vld [vmem:[%s1792_s19 + $0xd8] sm:$0xff]  ;;  %v285_v50 = vld [vmem:[%s1792_s19 + $0xe0] sm:$0xff]  ;;  %v286_v52 = vld [vmem:[%s1792_s19 + $0xe8] sm:$0xff] }
  0x53   : > { %v271_v53 = vld [vmem:[%s1792_s19 + $0x70] sm:$0xff]  ;;  %v272_v55 = vld [vmem:[%s1792_s19 + $0x78] sm:$0xff] }
  0x54   : > { %1339 = vmatpush3.bf16.msra.mxu0 %v1336_v14  ;;  %1367 = vmatpush3.bf16.msra.mxu1 %v1336_v14  ;;  %v287_v54 = vld [vmem:[%s1792_s19 + $0xf0] sm:$0xff]  ;;  %v288_v56 = vld [vmem:[%s1792_s19 + $0xf8] sm:$0xff] }
  0x55   : > { %1341 = vmatprep.subr.bf16.mxu0 %v1340_v17  ;;  %1360 = vmatprep.subr.bf16.mxu1 %v1340_v17  ;;  %v1881_v57 = vld [vmem:[%s2229_s2] ss:$0 sm:$0xff] }
  0x56   : > { %v1890_v2 = vld [vmem:[%s2230_s3] ss:$0 sm:$0xff] }
  0x58   : > { %1343 = vmatpush3.bf16.msra.mxu0 %v1340_v17  ;;  %1368 = vmatpush3.bf16.msra.mxu1 %v1340_v17 }
  0x59   : > { %1345 = vmatprep.subr.bf16.mxu0 %v1344_v20  ;;  %1361 = vmatprep.subr.bf16.mxu1 %v1344_v20 }
  0x5c   : > { %1347 = vmatpush3.bf16.msra.mxu0 %v1344_v20  ;;  %1369 = vmatpush3.bf16.msra.mxu1 %v1344_v20 }
  0x5d   : > { %1349 = vmatprep.subr.bf16.mxu0 %v1348_v23  ;;  %1362 = vmatprep.subr.bf16.mxu1 %v1348_v23 }
  0x60   : > { %1351 = vmatpush3.bf16.msra.mxu0 %v1348_v23  ;;  %1370 = vmatpush3.bf16.msra.mxu1 %v1348_v23 }
  0x61   : > { %1353 = vmatprep.subr.bf16.mxu0 %v1352_v26  ;;  %1363 = vmatprep.subr.bf16.mxu1 %v1352_v26 }
  0x64   : > { %1355 = vmatpush3.bf16.msra.mxu0 %v1352_v26  ;;  %1371 = vmatpush3.bf16.msra.mxu1 %v1352_v26 }
  0x67   : > { %1277 = vmatmul.mubr.f32.vlgmr.msra.gmra.mrb[0].mxu0 %v258_v27  ;;  %1301 = vmatmul.mubr.f32.vlgmr.msra.gmra.mrb[0].mxu1 %v274_v28 }
  0x68   : > { %1279 = vmatprep.mubr.f32.mxu0 %v259_v29  ;;  %1303 = vmatprep.mubr.f32.mxu1 %v275_v30 }
  0x6b   : > { %1280 = vmatmul.mubr.f32.gmra.mrb[2].mxu0 %v260_v31  ;;  %1304 = vmatmul.mubr.f32.gmra.mrb[2].mxu1 %v276_v32 }
  0x6c   : > { %1282 = vmatprep.mubr.f32.mxu0 %v261_v33  ;;  %1306 = vmatprep.mubr.f32.mxu1 %v277_v34 }
  0x6f   : > { %1283 = vmatmul.mubr.f32.gmra.mrb[4].mxu0 %v262_v35  ;;  %1307 = vmatmul.mubr.f32.gmra.mrb[4].mxu1 %v278_v36 }
  0x70   : > { %1285 = vmatprep.mubr.f32.mxu0 %v263_v37  ;;  %1309 = vmatprep.mubr.f32.mxu1 %v279_v38 }
  0x73   : > { %1286 = vmatmul.mubr.f32.gmra.mrb[6].mxu0 %v264_v39  ;;  %1310 = vmatmul.mubr.f32.gmra.mrb[6].mxu1 %v280_v40 }
  0x74   : > { %1288 = vmatprep.mubr.f32.mxu0 %v265_v41  ;;  %1312 = vmatprep.mubr.f32.mxu1 %v281_v42 }
  0x77   : > { %1289 = vmatmul.mubr.f32.gmra.mrb[8].mxu0 %v266_v43  ;;  %1313 = vmatmul.mubr.f32.gmra.mrb[8].mxu1 %v282_v44 }
  0x78   : > { %1291 = vmatprep.mubr.f32.mxu0 %v267_v45  ;;  %1315 = vmatprep.mubr.f32.mxu1 %v283_v46 }
  0x7b   : > { %1292 = vmatmul.mubr.f32.gmra.mrb[10].mxu0 %v268_v47  ;;  %1316 = vmatmul.mubr.f32.gmra.mrb[10].mxu1 %v284_v48 }
  0x7c   : > { %1294 = vmatprep.mubr.f32.mxu0 %v269_v49  ;;  %1318 = vmatprep.mubr.f32.mxu1 %v285_v50 }
  0x7f   : > { %1295 = vmatmul.mubr.f32.gmra.mrb[12].mxu0 %v270_v51  ;;  %1319 = vmatmul.mubr.f32.gmra.mrb[12].mxu1 %v286_v52 }
  0x80   : > { %1297 = vmatprep.mubr.f32.mxu0 %v271_v53  ;;  %1321 = vmatprep.mubr.f32.mxu1 %v287_v54 }
  0x83   : > { %1298 = vmatmul.mubr.f32.gmra.mrb[14].mxu0 %v272_v55  ;;  %1322 = vmatmul.mubr.f32.gmra.mrb[14].mxu1 %v288_v56 }
 0x13a   : > { %v1278_v58 = vpop.f32.mrb[0].mxu0  ;;  %v1302_v59 = vpop.f32.mrb[0].mxu1 }
 0x13b   : > { %v384_v60 = vadd.f32 %v1278_v58, %v1881_v57  ;;  %v464_v61 = vadd.f32 %v1302_v59, %v1881_v57  ;;  %v378_v62 = vpop.f32.mrb[1].mxu0  ;;  %v458_v63 = vpop.f32.mrb[1].mxu1 }
 0x13c   : > { %v379_v0 = vadd.f32 %v1881_v57, %v378_v62  ;;  %v459_v1 = vadd.f32 %v1881_v57, %v458_v63 }
 0x13d   : > { %v538_v3 = vmax.f32 %v384_v60, 0.0  ;;  %v554_v4 = vmax.f32 %v464_v61, 0.0 }
 0x13e   : > { %v537_v5 = vmax.f32 %v379_v0, 0.0  ;;  %v1281_v6 = vpop.f32.mrb[2].mxu0  ;;  %v1305_v7 = vpop.f32.mrb[2].mxu1  ;;  %v553_v14 = vmax.f32 %v459_v1, 0.0 }
 0x13f   : > { %v394_v8 = vadd.f32 %v1281_v6, %v1881_v57  ;;  %v388_v9 = vpop.f32.mrb[3].mxu0  ;;  %v474_v10 = vadd.f32 %v1305_v7, %v1881_v57  ;;  %v593_v11 = vmul.f32 %v1890_v2, %v554_v4  ;;  %v468_v12 = vpop.f32.mrb[3].mxu1  ;;  %v577_v13 = vmul.f32 %v1890_v2, %v538_v3 }
 0x140   : > { %v389_v15 = vadd.f32 %v1881_v57, %v388_v9  ;;  %v469_v16 = vadd.f32 %v1881_v57, %v468_v12  ;;  %v576_v17 = vmul.f32 %v1890_v2, %v537_v5  ;;  %v592_v30 = vmul.f32 %v1890_v2, %v553_v14 }
 0x141   : > { %v540_v18 = vmax.f32 %v394_v8, 0.0  ;;  %v556_v19 = vmax.f32 %v474_v10, 0.0  ;;  %v660_v20 = vsel %vm608_vm0, %v593_v11, 0.0  ;;  %v612_v21 = vsel %vm608_vm0, %v577_v13, 0.0 }
 0x142   : > { %661 = vadd.xlane.f32.xlu1 %v660_v20  ;;  %613 = vadd.xlane.f32.xlu0 %v612_v21  ;;  %v1284_v22 = vpop.f32.mrb[4].mxu0  ;;  %v1308_v23 = vpop.f32.mrb[4].mxu1  ;;  %v539_v31 = vmax.f32 %v389_v15, 0.0  ;;  %v555_v32 = vmax.f32 %v469_v16, 0.0  ;;  %v609_v34 = vsel %vm608_vm0, %v576_v17, 0.0  ;;  %v657_v44 = vsel %vm608_vm0, %v592_v30, 0.0 }
 0x143   : > { %v579_v24 = vmul.f32 %v1890_v2, %v540_v18  ;;  %v404_v25 = vadd.f32 %v1284_v22, %v1881_v57  ;;  %v398_v26 = vpop.f32.mrb[5].mxu0  ;;  %v595_v27 = vmul.f32 %v1890_v2, %v556_v19  ;;  %v478_v28 = vpop.f32.mrb[5].mxu1  ;;  %v484_v35 = vadd.f32 %v1308_v23, %v1881_v57 }
 0x144   : > { %v399_v29 = vadd.f32 %v1881_v57, %v398_v26  ;;  %v479_v36 = vadd.f32 %v1881_v57, %v478_v28  ;;  %v578_v45 = vmul.f32 %v1890_v2, %v539_v31  ;;  %v594_v46 = vmul.f32 %v1890_v2, %v555_v32 }
 0x145   : > { %v618_v33 = vsel %vm608_vm0, %v579_v24, 0.0  ;;  %v542_v39 = vmax.f32 %v404_v25, 0.0  ;;  %v666_v41 = vsel %vm608_vm0, %v595_v27, 0.0  ;;  %v558_v47 = vmax.f32 %v484_v35, 0.0 }
 0x146   : > { %619 = vadd.xlane.f32.xlu1 %v618_v33  ;;  %610 = vadd.xlane.f32.xlu0 %v609_v34  ;;  %v1287_v37 = vpop.f32.mrb[6].mxu0  ;;  %v1311_v38 = vpop.f32.mrb[6].mxu1  ;;  %v541_v40 = vmax.f32 %v399_v29, 0.0  ;;  %v557_v48 = vmax.f32 %v479_v36, 0.0  ;;  %v615_v58 = vsel %vm608_vm0, %v578_v45, 0.0  ;;  %v663_v59 = vsel %vm608_vm0, %v594_v46, 0.0 }
 0x147   : > { %v408_v42 = vpop.f32.mrb[7].mxu0  ;;  %v488_v43 = vpop.f32.mrb[7].mxu1  ;;  %v414_v51 = vadd.f32 %v1287_v37, %v1881_v57  ;;  %v581_v53 = vmul.f32 %v1890_v2, %v542_v39  ;;  %v494_v60 = vadd.f32 %v1311_v38, %v1881_v57  ;;  %v597_v62 = vmul.f32 %v1890_v2, %v558_v47 }
 0x148   : > { %v409_v52 = vadd.f32 %v1881_v57, %v408_v42  ;;  %v580_v54 = vmul.f32 %v1890_v2, %v541_v40  ;;  %v489_v61 = vadd.f32 %v1881_v57, %v488_v43  ;;  %v596_v63 = vmul.f32 %v1890_v2, %v557_v48 }
 0x149   : > { %v544_v3 = vmax.f32 %v414_v51, 0.0  ;;  %v624_v5 = vsel %vm608_vm0, %v581_v53, 0.0  ;;  %v560_v9 = vmax.f32 %v494_v60, 0.0  ;;  %v672_v11 = vsel %vm608_vm0, %v597_v62, 0.0 }
 0x14a   : > { %667 = vadd.xlane.f32.xlu1 %v666_v41  ;;  %658 = vadd.xlane.f32.xlu0 %v657_v44  ;;  %v1290_v49 = vpop.f32.mrb[8].mxu0  ;;  %v1314_v50 = vpop.f32.mrb[8].mxu1  ;;  %v543_v4 = vmax.f32 %v409_v52, 0.0  ;;  %v621_v6 = vsel %vm608_vm0, %v580_v54, 0.0  ;;  %v559_v10 = vmax.f32 %v489_v61, 0.0  ;;  %v669_v12 = vsel %vm608_vm0, %v596_v63, 0.0 }
 0x14b   : > { %v418_v55 = vpop.f32.mrb[9].mxu0  ;;  %v498_v56 = vpop.f32.mrb[9].mxu1  ;;  %v424_v15 = vadd.f32 %v1290_v49, %v1881_v57  ;;  %v583_v17 = vmul.f32 %v1890_v2, %v544_v3  ;;  %v504_v21 = vadd.f32 %v1314_v50, %v1881_v57  ;;  %v599_v23 = vmul.f32 %v1890_v2, %v560_v9 }
 0x14c   : > { %v419_v16 = vadd.f32 %v1881_v57, %v418_v55  ;;  %v582_v18 = vmul.f32 %v1890_v2, %v543_v4  ;;  %v499_v22 = vadd.f32 %v1881_v57, %v498_v56  ;;  %v598_v24 = vmul.f32 %v1890_v2, %v559_v10 }
 0x14d   : > { %v546_v27 = vmax.f32 %v424_v15, 0.0  ;;  %v630_v29 = vsel %vm608_vm0, %v583_v17, 0.0  ;;  %v562_v33 = vmax.f32 %v504_v21, 0.0  ;;  %v678_v35 = vsel %vm608_vm0, %v599_v23, 0.0 }
 0x14e   : > { %616 = vadd.xlane.f32.xlu1 %v615_v58  ;;  %664 = vadd.xlane.f32.xlu0 %v663_v59  ;;  %v1293_v0 = vpop.f32.mrb[10].mxu0  ;;  %v1317_v1 = vpop.f32.mrb[10].mxu1  ;;  %v545_v28 = vmax.f32 %v419_v16, 0.0  ;;  %v627_v30 = vsel %vm608_vm0, %v582_v18, 0.0  ;;  %v561_v34 = vmax.f32 %v499_v22, 0.0  ;;  %v675_v36 = vsel %vm608_vm0, %v598_v24, 0.0 }
 0x14f   : > { %v428_v7 = vpop.f32.mrb[11].mxu0  ;;  %v508_v8 = vpop.f32.mrb[11].mxu1  ;;  %v434_v37 = vadd.f32 %v1293_v0, %v1881_v57  ;;  %v585_v39 = vmul.f32 %v1890_v2, %v546_v27  ;;  %v514_v41 = vadd.f32 %v1317_v1, %v1881_v57  ;;  %v601_v43 = vmul.f32 %v1890_v2, %v562_v33 }
 0x150   : > { %v429_v38 = vadd.f32 %v1881_v57, %v428_v7  ;;  %v584_v40 = vmul.f32 %v1890_v2, %v545_v28  ;;  %v509_v42 = vadd.f32 %v1881_v57, %v508_v8  ;;  %v600_v44 = vmul.f32 %v1890_v2, %v561_v34 }
 0x151   : > { %v548_v45 = vmax.f32 %v434_v37, 0.0  ;;  %v636_v47 = vsel %vm608_vm0, %v585_v39, 0.0  ;;  %v564_v49 = vmax.f32 %v514_v41, 0.0  ;;  %v684_v51 = vsel %vm608_vm0, %v601_v43, 0.0 }
 0x152   : > { %625 = vadd.xlane.f32.xlu1 %v624_v5  ;;  %622 = vadd.xlane.f32.xlu0 %v621_v6  ;;  %v1296_v13 = vpop.f32.mrb[12].mxu0  ;;  %v1320_v14 = vpop.f32.mrb[12].mxu1  ;;  %v547_v46 = vmax.f32 %v429_v38, 0.0  ;;  %v633_v48 = vsel %vm608_vm0, %v584_v40, 0.0  ;;  %v563_v50 = vmax.f32 %v509_v42, 0.0  ;;  %v681_v52 = vsel %vm608_vm0, %v600_v44, 0.0 }
 0x153   : > { %v438_v19 = vpop.f32.mrb[13].mxu0  ;;  %v518_v20 = vpop.f32.mrb[13].mxu1  ;;  %v444_v53 = vadd.f32 %v1296_v13, %v1881_v57  ;;  %v587_v55 = vmul.f32 %v1890_v2, %v548_v45  ;;  %v524_v58 = vadd.f32 %v1320_v14, %v1881_v57  ;;  %v603_v60 = vmul.f32 %v1890_v2, %v564_v49 }
 0x154   : > { %v439_v54 = vadd.f32 %v1881_v57, %v438_v19  ;;  %v586_v56 = vmul.f32 %v1890_v2, %v547_v46  ;;  %v519_v59 = vadd.f32 %v1881_v57, %v518_v20  ;;  %v602_v61 = vmul.f32 %v1890_v2, %v563_v50 }
 0x155   : > { %v550_v62 = vmax.f32 %v444_v53, 0.0  ;;  %v642_v0 = vsel %vm608_vm0, %v587_v55, 0.0  ;;  %v566_v3 = vmax.f32 %v524_v58, 0.0  ;;  %v690_v5 = vsel %vm608_vm0, %v603_v60, 0.0 }
 0x156   : > { %673 = vadd.xlane.f32.xlu1 %v672_v11  ;;  %670 = vadd.xlane.f32.xlu0 %v669_v12  ;;  %v1299_v25 = vpop.f32.mrb[14].mxu0  ;;  %v1323_v26 = vpop.f32.mrb[14].mxu1  ;;  %v549_v63 = vmax.f32 %v439_v54, 0.0  ;;  %v639_v1 = vsel %vm608_vm0, %v586_v56, 0.0  ;;  %v565_v4 = vmax.f32 %v519_v59, 0.0  ;;  %v687_v6 = vsel %vm608_vm0, %v602_v61, 0.0 }
 0x157   : > { %v448_v31 = vpop.f32.mrb[15].mxu0  ;;  %v528_v32 = vpop.f32.mrb[15].mxu1  ;;  %v454_v7 = vadd.f32 %v1299_v25, %v1881_v57  ;;  %v589_v9 = vmul.f32 %v1890_v2, %v550_v62  ;;  %v534_v11 = vadd.f32 %v1323_v26, %v1881_v57  ;;  %v605_v13 = vmul.f32 %v1890_v2, %v566_v3 }
 0x158   : > { %v449_v8 = vadd.f32 %v1881_v57, %v448_v31  ;;  %v588_v10 = vmul.f32 %v1890_v2, %v549_v63  ;;  %v529_v12 = vadd.f32 %v1881_v57, %v528_v32  ;;  %v604_v14 = vmul.f32 %v1890_v2, %v565_v4 }
 0x159   : > { %v552_v15 = vmax.f32 %v454_v7, 0.0  ;;  %v648_v17 = vsel %vm608_vm0, %v589_v9, 0.0  ;;  %v568_v19 = vmax.f32 %v534_v11, 0.0  ;;  %v696_v20 = vsel %vm608_vm0, %v605_v13, 0.0 }
 0x15a   : > { %631 = vadd.xlane.f32.xlu1 %v630_v29  ;;  %628 = vadd.xlane.f32.xlu0 %v627_v30  ;;  %v551_v16 = vmax.f32 %v449_v8, 0.0  ;;  %v645_v18 = vsel %vm608_vm0, %v588_v10, 0.0  ;;  %v567_v21 = vmax.f32 %v529_v12, 0.0  ;;  %v693_v22 = vsel %vm608_vm0, %v604_v14, 0.0  ;;  %v1984_v30 = vld [vmem:[#allocation2] ss:$0 sm:$0xff] }
 0x15b   : > { %v591_v57 = vmul.f32 %v1890_v2, %v552_v15  ;;  %v607_v26 = vmul.f32 %v1890_v2, %v568_v19 }
 0x15c   : > { %v590_v23 = vmul.f32 %v1890_v2, %v551_v16  ;;  %v606_v27 = vmul.f32 %v1890_v2, %v567_v21 }
 0x15d   : > { %v654_v24 = vsel %vm608_vm0, %v591_v57, 0.0  ;;  %v702_v28 = vsel %vm608_vm0, %v607_v26, 0.0 }
 0x15e   : > { %679 = vadd.xlane.f32.xlu1 %v678_v35  ;;  %676 = vadd.xlane.f32.xlu0 %v675_v36  ;;  %v651_v25 = vsel %vm608_vm0, %v590_v23, 0.0  ;;  %v699_v29 = vsel %vm608_vm0, %v606_v27, 0.0 }
 0x162   : > { %637 = vadd.xlane.f32.xlu1 %v636_v47  ;;  %634 = vadd.xlane.f32.xlu0 %v633_v48 }
 0x166   : > { %685 = vadd.xlane.f32.xlu1 %v684_v51  ;;  %682 = vadd.xlane.f32.xlu0 %v681_v52 }
 0x16a   : > { %643 = vadd.xlane.f32.xlu1 %v642_v0  ;;  %640 = vadd.xlane.f32.xlu0 %v639_v1 }
 0x16e   : > { %691 = vadd.xlane.f32.xlu1 %v690_v5  ;;  %688 = vadd.xlane.f32.xlu0 %v687_v6 }
 0x172   : > { %649 = vadd.xlane.f32.xlu1 %v648_v17  ;;  %646 = vadd.xlane.f32.xlu0 %v645_v18 }
 0x176   : > { %697 = vadd.xlane.f32.xlu1 %v696_v20  ;;  %694 = vadd.xlane.f32.xlu0 %v693_v22 }
 0x17a   : > { %655 = vadd.xlane.f32.xlu1 %v654_v24  ;;  %652 = vadd.xlane.f32.xlu0 %v651_v25 }
 0x17e   : > { %703 = vadd.xlane.f32.xlu1 %v702_v28  ;;  %700 = vadd.xlane.f32.xlu0 %v699_v29 }
 0x1cf   : > { %v662_v31 = vpop.xlane.xlu1 %661  ;;  %v614_v32 = vpop.xlane.xlu0 %613 }
 0x1d0   : > { %v729_v33 = vadd.f32 %v1984_v30, %v662_v31  ;;  %v713_v34 = vadd.f32 %v1984_v30, %v614_v32 }
 0x1d2   : > { %1471 = vtanh.f32 %v729_v33 }
 0x1d3   : > { %1473 = vtanh.f32 %v713_v34  ;;  %v620_v35 = vpop.xlane.xlu1 %619  ;;  %v611_v2 = vpop.xlane.xlu0 %610 }
 0x1d4   : > { %v715_v36 = vadd.f32 %v1984_v30, %v620_v35  ;;  %v712_v37 = vadd.f32 %v1984_v30, %v611_v2 }
 0x1d6   : > { %1475 = vtanh.f32 %v715_v36 }
 0x1d7   : > { %1477 = vtanh.f32 %v712_v37  ;;  %v668_v38 = vpop.xlane.xlu1 %667  ;;  %v659_v39 = vpop.xlane.xlu0 %658 }
 0x1d8   : > { %v731_v40 = vadd.f32 %v1984_v30, %v668_v38  ;;  %v728_v41 = vadd.f32 %v1984_v30, %v659_v39 }
 0x1da   : > { %1479 = vtanh.f32 %v731_v40 }
 0x1db   : > { %1481 = vtanh.f32 %v728_v41  ;;  %v617_v42 = vpop.xlane.xlu1 %616  ;;  %v665_v43 = vpop.xlane.xlu0 %664 }
 0x1dc   : > { %v1472_v44 = vpop.eup %1471  ;;  %v714_v45 = vadd.f32 %v1984_v30, %v617_v42  ;;  %v730_v46 = vadd.f32 %v1984_v30, %v665_v43 }
 0x1dd   : > { %v1474_v47 = vpop.eup %1473  ;;  %794 = vst.msk [vmem:[%s1995_s18 + $0x88] sm:$0xff] %vm776_vm1, %v1472_v44 }
 0x1de   : > { %778 = vst.msk [vmem:[%s1995_s18 + $0x8] sm:$0xff] %vm776_vm1, %v1474_v47  ;;  %1483 = vtanh.f32 %v714_v45 }
 0x1df   : > { %1485 = vtanh.f32 %v730_v46  ;;  %v626_v48 = vpop.xlane.xlu1 %625  ;;  %v623_v49 = vpop.xlane.xlu0 %622 }
 0x1e0   : > { %v1476_v50 = vpop.eup %1475  ;;  %v717_v51 = vadd.f32 %v1984_v30, %v626_v48  ;;  %v716_v52 = vadd.f32 %v1984_v30, %v623_v49 }
 0x1e1   : > { %v1478_v53 = vpop.eup %1477  ;;  %780 = vst.msk [vmem:[%s1995_s18 + $0x18] sm:$0xff] %vm776_vm1, %v1476_v50 }
 0x1e2   : > { %777 = vst.msk [vmem:[%s1995_s18] sm:$0xff] %vm776_vm1, %v1478_v53  ;;  %1487 = vtanh.f32 %v717_v51 }
 0x1e3   : > { %1489 = vtanh.f32 %v716_v52  ;;  %v674_v54 = vpop.xlane.xlu1 %673  ;;  %v671_v55 = vpop.xlane.xlu0 %670 }
 0x1e4   : > { %v1480_v56 = vpop.eup %1479  ;;  %v733_v58 = vadd.f32 %v1984_v30, %v674_v54  ;;  %v732_v59 = vadd.f32 %v1984_v30, %v671_v55 }
 0x1e5   : > { %v1482_v60 = vpop.eup %1481  ;;  %796 = vst.msk [vmem:[%s1995_s18 + $0x98] sm:$0xff] %vm776_vm1, %v1480_v56 }
 0x1e6   : > { %793 = vst.msk [vmem:[%s1995_s18 + $0x80] sm:$0xff] %vm776_vm1, %v1482_v60  ;;  %1491 = vtanh.f32 %v733_v58 }
 0x1e7   : > { %1493 = vtanh.f32 %v732_v59  ;;  %v632_v61 = vpop.xlane.xlu1 %631  ;;  %v629_v62 = vpop.xlane.xlu0 %628 }
 0x1e8   : > { %v1484_v63 = vpop.eup %1483  ;;  %v719_v0 = vadd.f32 %v1984_v30, %v632_v61  ;;  %v718_v1 = vadd.f32 %v1984_v30, %v629_v62 }
 0x1e9   : > { %v1486_v3 = vpop.eup %1485  ;;  %779 = vst.msk [vmem:[%s1995_s18 + $0x10] sm:$0xff] %vm776_vm1, %v1484_v63 }
 0x1ea   : > { %795 = vst.msk [vmem:[%s1995_s18 + $0x90] sm:$0xff] %vm776_vm1, %v1486_v3  ;;  %1495 = vtanh.f32 %v719_v0 }
 0x1eb   : > { %1497 = vtanh.f32 %v718_v1  ;;  %v680_v4 = vpop.xlane.xlu1 %679  ;;  %v677_v5 = vpop.xlane.xlu0 %676 }
 0x1ec   : > { %v1488_v6 = vpop.eup %1487  ;;  %v735_v7 = vadd.f32 %v1984_v30, %v680_v4  ;;  %v734_v8 = vadd.f32 %v1984_v30, %v677_v5 }
 0x1ed   : > { %v1490_v9 = vpop.eup %1489  ;;  %782 = vst.msk [vmem:[%s1995_s18 + $0x28] sm:$0xff] %vm776_vm1, %v1488_v6 }
 0x1ee   : > { %781 = vst.msk [vmem:[%s1995_s18 + $0x20] sm:$0xff] %vm776_vm1, %v1490_v9  ;;  %1499 = vtanh.f32 %v735_v7 }
 0x1ef   : > { %1501 = vtanh.f32 %v734_v8  ;;  %v638_v10 = vpop.xlane.xlu1 %637  ;;  %v635_v11 = vpop.xlane.xlu0 %634 }
 0x1f0   : > { %v1492_v12 = vpop.eup %1491  ;;  %v721_v13 = vadd.f32 %v1984_v30, %v638_v10  ;;  %v720_v14 = vadd.f32 %v1984_v30, %v635_v11 }
 0x1f1   : > { %v1494_v15 = vpop.eup %1493  ;;  %798 = vst.msk [vmem:[%s1995_s18 + $0xa8] sm:$0xff] %vm776_vm1, %v1492_v12 }
 0x1f2   : > { %797 = vst.msk [vmem:[%s1995_s18 + $0xa0] sm:$0xff] %vm776_vm1, %v1494_v15  ;;  %1503 = vtanh.f32 %v721_v13 }
 0x1f3   : > { %1505 = vtanh.f32 %v720_v14  ;;  %v686_v16 = vpop.xlane.xlu1 %685  ;;  %v683_v17 = vpop.xlane.xlu0 %682 }
 0x1f4   : > { %v1496_v18 = vpop.eup %1495  ;;  %v737_v19 = vadd.f32 %v1984_v30, %v686_v16  ;;  %v736_v20 = vadd.f32 %v1984_v30, %v683_v17 }
 0x1f5   : > { %v1498_v21 = vpop.eup %1497  ;;  %784 = vst.msk [vmem:[%s1995_s18 + $0x38] sm:$0xff] %vm776_vm1, %v1496_v18 }
 0x1f6   : > { %783 = vst.msk [vmem:[%s1995_s18 + $0x30] sm:$0xff] %vm776_vm1, %v1498_v21  ;;  %1507 = vtanh.f32 %v737_v19 }
 0x1f7   : > { %1509 = vtanh.f32 %v736_v20  ;;  %v644_v22 = vpop.xlane.xlu1 %643  ;;  %v641_v57 = vpop.xlane.xlu0 %640 }
 0x1f8   : > { %v1500_v23 = vpop.eup %1499  ;;  %v723_v24 = vadd.f32 %v1984_v30, %v644_v22  ;;  %v722_v25 = vadd.f32 %v1984_v30, %v641_v57 }
 0x1f9   : > { %v1502_v26 = vpop.eup %1501  ;;  %800 = vst.msk [vmem:[%s1995_s18 + $0xb8] sm:$0xff] %vm776_vm1, %v1500_v23 }
 0x1fa   : > { %799 = vst.msk [vmem:[%s1995_s18 + $0xb0] sm:$0xff] %vm776_vm1, %v1502_v26  ;;  %1511 = vtanh.f32 %v723_v24 }
 0x1fb   : > { %1513 = vtanh.f32 %v722_v25  ;;  %v692_v27 = vpop.xlane.xlu1 %691  ;;  %v689_v28 = vpop.xlane.xlu0 %688 }
 0x1fc   : > { %v1504_v29 = vpop.eup %1503  ;;  %v739_v31 = vadd.f32 %v1984_v30, %v692_v27  ;;  %v738_v32 = vadd.f32 %v1984_v30, %v689_v28 }
 0x1fd   : > { %v1506_v33 = vpop.eup %1505  ;;  %786 = vst.msk [vmem:[%s1995_s18 + $0x48] sm:$0xff] %vm776_vm1, %v1504_v29 }
 0x1fe   : > { %785 = vst.msk [vmem:[%s1995_s18 + $0x40] sm:$0xff] %vm776_vm1, %v1506_v33  ;;  %1515 = vtanh.f32 %v739_v31 }
 0x1ff   : > { %1517 = vtanh.f32 %v738_v32  ;;  %v650_v34 = vpop.xlane.xlu1 %649  ;;  %v647_v35 = vpop.xlane.xlu0 %646 }
 0x200   : > { %v1508_v2 = vpop.eup %1507  ;;  %v725_v36 = vadd.f32 %v1984_v30, %v650_v34  ;;  %v724_v37 = vadd.f32 %v1984_v30, %v647_v35 }
 0x201   : > { %v1510_v38 = vpop.eup %1509  ;;  %802 = vst.msk [vmem:[%s1995_s18 + $0xc8] sm:$0xff] %vm776_vm1, %v1508_v2 }
 0x202   : > { %801 = vst.msk [vmem:[%s1995_s18 + $0xc0] sm:$0xff] %vm776_vm1, %v1510_v38  ;;  %1519 = vtanh.f32 %v725_v36 }
 0x203   : > { %1521 = vtanh.f32 %v724_v37  ;;  %v698_v39 = vpop.xlane.xlu1 %697  ;;  %v695_v40 = vpop.xlane.xlu0 %694 }
 0x204   : > { %v1512_v41 = vpop.eup %1511  ;;  %v741_v42 = vadd.f32 %v1984_v30, %v698_v39  ;;  %v740_v43 = vadd.f32 %v1984_v30, %v695_v40 }
 0x205   : > { %v1514_v44 = vpop.eup %1513  ;;  %788 = vst.msk [vmem:[%s1995_s18 + $0x58] sm:$0xff] %vm776_vm1, %v1512_v41 }
 0x206   : > { %787 = vst.msk [vmem:[%s1995_s18 + $0x50] sm:$0xff] %vm776_vm1, %v1514_v44  ;;  %1523 = vtanh.f32 %v741_v42 }
 0x207   : > { %1525 = vtanh.f32 %v740_v43  ;;  %v656_v45 = vpop.xlane.xlu1 %655  ;;  %v653_v46 = vpop.xlane.xlu0 %652 }
 0x208   : > { %v1516_v47 = vpop.eup %1515  ;;  %v727_v48 = vadd.f32 %v1984_v30, %v656_v45  ;;  %v726_v49 = vadd.f32 %v1984_v30, %v653_v46 }
 0x209   : > { %v1518_v50 = vpop.eup %1517  ;;  %804 = vst.msk [vmem:[%s1995_s18 + $0xd8] sm:$0xff] %vm776_vm1, %v1516_v47 }
 0x20a   : > { %803 = vst.msk [vmem:[%s1995_s18 + $0xd0] sm:$0xff] %vm776_vm1, %v1518_v50  ;;  %1527 = vtanh.f32 %v727_v48 }
 0x20b   : > { %1529 = vtanh.f32 %v726_v49  ;;  %v704_v51 = vpop.xlane.xlu1 %703  ;;  %v701_v52 = vpop.xlane.xlu0 %700 }
 0x20c   : > { %v1520_v53 = vpop.eup %1519  ;;  %v743_v54 = vadd.f32 %v1984_v30, %v704_v51  ;;  %v742_v55 = vadd.f32 %v1984_v30, %v701_v52 }
 0x20d   : > { %v1522_v56 = vpop.eup %1521  ;;  %790 = vst.msk [vmem:[%s1995_s18 + $0x68] sm:$0xff] %vm776_vm1, %v1520_v53 }
 0x20e   : > { %789 = vst.msk [vmem:[%s1995_s18 + $0x60] sm:$0xff] %vm776_vm1, %v1522_v56  ;;  %1531 = vtanh.f32 %v743_v54 }
 0x20f   : > { %1533 = vtanh.f32 %v742_v55 }
 0x210   : > { %v1524_v58 = vpop.eup %1523 }
 0x211   : > { %v1526_v59 = vpop.eup %1525  ;;  %806 = vst.msk [vmem:[%s1995_s18 + $0xe8] sm:$0xff] %vm776_vm1, %v1524_v58 }
 0x212   : > { %805 = vst.msk [vmem:[%s1995_s18 + $0xe0] sm:$0xff] %vm776_vm1, %v1526_v59 }
 0x214   : > { %v1528_v60 = vpop.eup %1527  ;;  %815 = sbr.rel (!%p1739_p8) target bundleno = 595 (0x253), region = 48 }
 0x215   : > { %v1530_v61 = vpop.eup %1529  ;;  %792 = vst.msk [vmem:[%s1995_s18 + $0x78] sm:$0xff] %vm776_vm1, %v1528_v60 }
 0x216   : > { %791 = vst.msk [vmem:[%s1995_s18 + $0x70] sm:$0xff] %vm776_vm1, %v1530_v61 }
 0x218   : > { %v1532_v30 = vpop.eup %1531 }
 0x219   : > { %v1534_v62 = vpop.eup %1533  ;;  %808 = vst.msk [vmem:[%s1995_s18 + $0xf8] sm:$0xff] %vm776_vm1, %v1532_v30 }
 0x21a   : > { %807 = vst.msk [vmem:[%s1995_s18 + $0xf0] sm:$0xff] %vm776_vm1, %v1534_v62 }
 0x21b   : > { %s2247_s11 = smov (!%p818_p7, %s817_s11), 32 }
 0x21c   : > { %s1177_s20 = sshll.u32 %s2247_s11, 7 }
 0x21d   : > { %p1180_p11 = scmp.eq.s32.totalorder %s1177_s20, 0 }
 0x21e   : > { %s2098_s29 = sshrl.u32 (!%p1180_p11), %s2247_s11, 5 }
 0x21f   : > { %826 = sbr.rel (%p1180_p11) target bundleno = 595 (0x253), region = 52  ;;  %p1181_p8 = scmp.le.s32.totalorder (!%p1180_p11), %s2098_s29, 0 }
 0x226   : > { %1112 = sbr.rel (%p1181_p8) target bundleno = 574 (0x23e), region = 134  ;;  %s2235_s4 = smov (!%p1181_p8), %s2092_s17 }
 0x227   : > { %s2236_s25 = smov (!%p1181_p8), %s1995_s18  ;;  %s2107_s26 = smov (!%p1181_p8), 0  }
 0x228   : > { %s2109_s28 = smov (!%p1181_p8), 0  }
 0x22d LB: >> { %v950_v63 = vld [vmem:[%s1637_s25] sm:$0xff]  ;;  %v952_v0 = vld [vmem:[%s1637_s25 + $0x8] sm:$0xff]  ;;  %v954_v1 = vld [vmem:[%s1637_s25 + $0x10] sm:$0xff]  ;;  %s1014_s30 = sadd.s32 1, %s1641_s26  ;;  %s944_s28 = sadd.s32 1, %s1645_s28   ;;  %s1645_s28 = sphi %s2109_s28, %s944_s28   ;;  %s1641_s26 = sphi %s2107_s26, %s2239_s26   ;;  %s1637_s25 = sphi %s2236_s25, %s2238_s25   ;;  %s1633_s4 = sphi %s2235_s4, %s2237_s4  }
 0x22e   : >> { %951 = vst [vmem:[%s1633_s4] sm:$0xff] %v950_v63  ;;  %953 = vst [vmem:[%s1633_s4 + $0x8] sm:$0xff] %v952_v0  ;;  %v956_v3 = vld [vmem:[%s1637_s25 + $0x18] sm:$0xff]  ;;  %v958_v4 = vld [vmem:[%s1637_s25 + $0x20] sm:$0xff]  ;;  %p1015_p6 = scmp.ge.s32.totalorder %s1014_s30, %s2098_s29  ;;  %p943_p9 = scmp.ge.s32.totalorder %s944_s28, %s2098_s29 }
 0x22f   : >> { %955 = vst [vmem:[%s1633_s4 + $0x10] sm:$0xff] %v954_v1  ;;  %v960_v5 = vld [vmem:[%s1637_s25 + $0x28] sm:$0xff]  ;;  %957 = vst [vmem:[%s1633_s4 + $0x18] sm:$0xff] %v956_v3  ;;  %v962_v6 = vld [vmem:[%s1637_s25 + $0x30] sm:$0xff] }
 0x230   : >> { %959 = vst [vmem:[%s1633_s4 + $0x20] sm:$0xff] %v958_v4  ;;  %961 = vst [vmem:[%s1633_s4 + $0x28] sm:$0xff] %v960_v5  ;;  %v964_v7 = vld [vmem:[%s1637_s25 + $0x38] sm:$0xff]  ;;  %v966_v8 = vld [vmem:[%s1637_s25 + $0x40] sm:$0xff]  ;;  %s2249_s30 = smov (%p1015_p6, %s1014_s30), 0 }
 0x231   : >> { %963 = vst [vmem:[%s1633_s4 + $0x30] sm:$0xff] %v962_v6  ;;  %965 = vst [vmem:[%s1633_s4 + $0x38] sm:$0xff] %v964_v7  ;;  %v968_v9 = vld [vmem:[%s1637_s25 + $0x48] sm:$0xff]  ;;  %v970_v10 = vld [vmem:[%s1637_s25 + $0x50] sm:$0xff]  ;;  %s1182_s6 = sshll.u32 %s2249_s30, 8  ;;  %s2239_s26 = smov %s2249_s30 }
 0x232   : >> { %967 = vst [vmem:[%s1633_s4 + $0x40] sm:$0xff] %v966_v8  ;;  %v972_v11 = vld [vmem:[%s1637_s25 + $0x58] sm:$0xff]  ;;  %969 = vst [vmem:[%s1633_s4 + $0x48] sm:$0xff] %v968_v9  ;;  %v974_v12 = vld [vmem:[%s1637_s25 + $0x60] sm:$0xff]  ;;  %s2165_s7 = scalar_lea.vmem %s1995_s18, %s1182_s6 [#allocation5]   ;;  %s1020_s8 = scalar_lea.vmem %s2092_s17, %s1182_s6  }
 0x233   : >> { %971 = vst [vmem:[%s1633_s4 + $0x50] sm:$0xff] %v970_v10  ;;  %973 = vst [vmem:[%s1633_s4 + $0x58] sm:$0xff] %v972_v11  ;;  %v976_v13 = vld [vmem:[%s1637_s25 + $0x68] sm:$0xff]  ;;  %v978_v14 = vld [vmem:[%s1637_s25 + $0x70] sm:$0xff] }
 0x234   : >> { %975 = vst [vmem:[%s1633_s4 + $0x60] sm:$0xff] %v974_v12  ;;  %977 = vst [vmem:[%s1633_s4 + $0x68] sm:$0xff] %v976_v13  ;;  %v980_v15 = vld [vmem:[%s1637_s25 + $0x78] sm:$0xff]  ;;  %v982_v16 = vld [vmem:[%s1637_s25 + $0x80] sm:$0xff] }
 0x235   : >> { %979 = vst [vmem:[%s1633_s4 + $0x70] sm:$0xff] %v978_v14  ;;  %v984_v17 = vld [vmem:[%s1637_s25 + $0x88] sm:$0xff]  ;;  %981 = vst [vmem:[%s1633_s4 + $0x78] sm:$0xff] %v980_v15  ;;  %v986_v18 = vld [vmem:[%s1637_s25 + $0x90] sm:$0xff] }
 0x236   : >> { %983 = vst [vmem:[%s1633_s4 + $0x80] sm:$0xff] %v982_v16  ;;  %985 = vst [vmem:[%s1633_s4 + $0x88] sm:$0xff] %v984_v17  ;;  %v988_v19 = vld [vmem:[%s1637_s25 + $0x98] sm:$0xff]  ;;  %v990_v20 = vld [vmem:[%s1637_s25 + $0xa0] sm:$0xff] }
 0x237   : >> { %987 = vst [vmem:[%s1633_s4 + $0x90] sm:$0xff] %v986_v18  ;;  %989 = vst [vmem:[%s1633_s4 + $0x98] sm:$0xff] %v988_v19  ;;  %v992_v21 = vld [vmem:[%s1637_s25 + $0xa8] sm:$0xff]  ;;  %v994_v22 = vld [vmem:[%s1637_s25 + $0xb0] sm:$0xff]  ;;  %946 = sbr.rel (!%p943_p9) target bundleno = 557 (0x22d), region = 140 }
 0x238   : >> { %991 = vst [vmem:[%s1633_s4 + $0xa0] sm:$0xff] %v990_v20  ;;  %v996_v57 = vld [vmem:[%s1637_s25 + $0xb8] sm:$0xff]  ;;  %993 = vst [vmem:[%s1633_s4 + $0xa8] sm:$0xff] %v992_v21  ;;  %v998_v23 = vld [vmem:[%s1637_s25 + $0xc0] sm:$0xff] }
 0x239   : >> { %995 = vst [vmem:[%s1633_s4 + $0xb0] sm:$0xff] %v994_v22  ;;  %997 = vst [vmem:[%s1633_s4 + $0xb8] sm:$0xff] %v996_v57  ;;  %v1000_v24 = vld [vmem:[%s1637_s25 + $0xc8] sm:$0xff]  ;;  %v1002_v25 = vld [vmem:[%s1637_s25 + $0xd0] sm:$0xff] }
 0x23a   : >> { %999 = vst [vmem:[%s1633_s4 + $0xc0] sm:$0xff] %v998_v23  ;;  %1001 = vst [vmem:[%s1633_s4 + $0xc8] sm:$0xff] %v1000_v24  ;;  %v1004_v26 = vld [vmem:[%s1637_s25 + $0xd8] sm:$0xff]  ;;  %v1006_v27 = vld [vmem:[%s1637_s25 + $0xe0] sm:$0xff] }
 0x23b   : >> { %1003 = vst [vmem:[%s1633_s4 + $0xd0] sm:$0xff] %v1002_v25  ;;  %v1008_v28 = vld [vmem:[%s1637_s25 + $0xe8] sm:$0xff]  ;;  %1005 = vst [vmem:[%s1633_s4 + $0xd8] sm:$0xff] %v1004_v26  ;;  %v1010_v29 = vld [vmem:[%s1637_s25 + $0xf0] sm:$0xff] }
 0x23c   : >> { %1007 = vst [vmem:[%s1633_s4 + $0xe0] sm:$0xff] %v1006_v27  ;;  %1009 = vst [vmem:[%s1633_s4 + $0xe8] sm:$0xff] %v1008_v28  ;;  %v1012_v31 = vld [vmem:[%s1637_s25 + $0xf8] sm:$0xff]  ;;  %s2238_s25 = smov %s2165_s7 }
 0x23d   : >> { %1011 = vst [vmem:[%s1633_s4 + $0xf0] sm:$0xff] %v1010_v29  ;;  %1013 = vst [vmem:[%s1633_s4 + $0xf8] sm:$0xff] %v1012_v31  ;;  %s2237_s4 = smov %s1020_s8 }
 0x23e PF: > { %s2206_s10 = sand.u32 31, %s2247_s11   ;;  %s1194_s12 = sshll.u32 %s2098_s29, 8 }
 0x23f   : > { %s1025_s13 = scalar_lea.vmem %s1995_s18, %s1194_s12 [#allocation5]   ;;  %s1027_s19 = scalar_lea.vmem %s2092_s17, %s1194_s12  }
 0x240   : > { %p1187_p10 = scmp.le.s32.totalorder %s2206_s10, 0 }
 0x241   : > { %s1647_s14 = smov (!%p1187_p10), %s1027_s19   ;;  %s1651_s15 = smov (!%p1187_p10), %s1025_s13  }
 0x242   : > { %1126 = sbr.rel (%p1187_p10) target bundleno = 595 (0x253), region = 145  ;;  %s1655_s9 = smov (!%p1187_p10), 0  }
 0x243   : > { %s1659_s23 = smov (!%p1187_p10), 0  }
 0x249 LB: >> { %v1037_v32 = vld [vmem:[%s1653_s15] sm:$0xff]  ;;  %s1039_s11 = sadd.s32 1, %s1657_s9  ;;  %s1031_s23 = sadd.s32 1, %s1661_s23   ;;  %s1661_s23 = sphi %s1659_s23, %s1031_s23   ;;  %s1657_s9 = sphi %s1655_s9, %s1656_s9   ;;  %s1653_s15 = sphi %s1651_s15, %s1044_s15   ;;  %s1649_s14 = sphi %s1647_s14, %s1045_s14  }
 0x24a   : >> { %1038 = vst [vmem:[%s1649_s14] sm:$0xff] %v1037_v32  ;;  %p1040_p12 = scmp.ge.s32.totalorder %s1039_s11, %s2206_s10  ;;  %p1030_p13 = scmp.ge.s32.totalorder %s1031_s23, %s2206_s10 }
 0x24c   : >> { %s2251_s11 = smov (%p1040_p12, %s1039_s11), 0  ;;  %1033 = sbr.rel (!%p1030_p13) target bundleno = 585 (0x249), region = 151 }
 0x24d   : >> { %s1188_s18 = sshll.u32 %s2251_s11, 3  ;;  %s1656_s9 = smov %s2251_s11  }
 0x24e   : >> { %s1044_s15 = scalar_lea.vmem %s1025_s13, %s1188_s18 [#allocation5]   ;;  %s1045_s14 = scalar_lea.vmem %s1027_s19, %s1188_s18  }
 0x253 PF: > { %p17_p1 = scmp.ge.s32.totalorder %s1721_s24, 4   ;;  %s2240_s20 = smov %s1621_s21 }
 0x254   : > { %s2241_s21 = smov %s1625_s22  ;;  %s2242_s22 = smov %s1731_s27 }
 0x255   : > { %s2243_s23 = smov %s1721_s24  ;;  %19 = sbr.rel (!%p17_p1) target bundleno = 6 (0x6), region = 162 }
 0x25c   :  { %1061 = vsyncpa [#allocation4], 1 }
 0x25d   :  { %1063 = vsyncpa [#allocation4 + $0x1], 1 }

</bundles_post_ra>
